<compile_context>
chip_gen: v7x
topology: tpu7x:2x2x1
jax: 0.10.0
libtpu: 0.0.40
codegen_flags: <defaults>
</compile_context>

<pallas_src>
import functools

import jax
import jax.numpy as jnp
from jax.experimental import pallas as pl
from jax.experimental.pallas import tpu as pltpu

LEAKY_SLOPE = 0.01        # torch.nn.LeakyReLU default negative_slope
_MAX_TILE_B = 4096        # rows per grid step (fits v7x 64 MiB VMEM budget)
_VMEM_LIMIT = 32 * 1024 * 1024


def _round_up(n, m):
    return ((n + m - 1) // m) * m


def _cdiv(a, b):
    return -(-a // b)


def _leaky_relu(h):
    return jnp.where(h >= 0, h, LEAKY_SLOPE * h)


def _dense(h, w_ref, b_ref):
    """h @ W + b : bf16 MXU inputs, f32 accumulate, f32 bias add."""
    return (
        jnp.dot(h.astype(jnp.bfloat16), w_ref[...],
                preferred_element_type=jnp.float32)
        + b_ref[...]
    )


def wae_forward_kernel(
    x_ref,
    # encoder params (weights bf16, biases f32)
    we1_ref, be1_ref, we2_ref, be2_ref, we3_ref, be3_ref, we4_ref, be4_ref,
    # decoder params
    wd1_ref, bd1_ref, wd2_ref, bd2_ref, wd3_ref, bd3_ref, wd4_ref, bd4_ref,
    # outputs
    recon_ref, z_ref,
):
    h = x_ref[...]                                            # (TILE_B, in)

    # ----- encoder: Linear -> LeakyReLU (x3) -> Linear -----
    h = _leaky_relu(_dense(h, we1_ref, be1_ref))
    h = _leaky_relu(_dense(h, we2_ref, be2_ref))
    h = _leaky_relu(_dense(h, we3_ref, be3_ref))
    z = _dense(h, we4_ref, be4_ref)                           # (TILE_B, latent) f32
    z_ref[...] = z.astype(z_ref.dtype)

    # ----- decoder: Linear -> LeakyReLU (x3) -> Linear -> Sigmoid -----
    h = _leaky_relu(_dense(z, wd1_ref, bd1_ref))
    h = _leaky_relu(_dense(h, wd2_ref, bd2_ref))
    h = _leaky_relu(_dense(h, wd3_ref, bd3_ref))
    logits = _dense(h, wd4_ref, bd4_ref)
    recon_ref[...] = jax.nn.sigmoid(logits).astype(recon_ref.dtype)  # EUP, f32


@functools.partial(jax.jit, static_argnames=("tile_b", "out_dtype"))
def wae_forward(x, params, tile_b=None, out_dtype=jnp.float32):
    """Returns (recon, z), matching WAE.forward(x).

    out_dtype=jnp.bfloat16 halves output HBM traffic when the consumer can
    accept it; default f32 preserves the reference semantics.
    """
    B, input_size = x.shape
    latent_size = params["we4"].shape[1]

    # ---- choose batch tile (sublane multiple of 8, >=2 grid steps if B>8) ----
    if tile_b is None:
        b8 = _round_up(B, 8)
        if b8 <= 8:
            tile_b = 8
        else:
            # at least 2 steps so v7x can shard the batch axis across its TCs;
            # at large B pick the step count that keeps padding waste small.
            n_steps = max(2, _cdiv(b8, _MAX_TILE_B))
            tile_b = min(_MAX_TILE_B, _round_up(_cdiv(b8, n_steps), 8))
    tile_b = max(8, _round_up(int(tile_b), 8))
    B_pad = _round_up(B, tile_b)
    x_p = x if B_pad == B else jnp.pad(x, ((0, B_pad - B), (0, 0)))
    grid = (B_pad // tile_b,)

    # ---- build kernel operands: weights in bf16, biases in f32 ----
    wb = []
    for prefix in ("e", "d"):
        for idx in range(1, 5):
            wb.append(params[f"w{prefix}{idx}"].astype(jnp.bfloat16))
            wb.append(params[f"b{prefix}{idx}"].astype(jnp.float32))

    def act_spec(feat):
        # batch-tiled, pipelined activation block (default double-buffered)
        return pl.BlockSpec((tile_b, feat), lambda i: (i, 0))

    def resident_spec(arr):
        # full-array block, constant index -> DMA'd once, stays in VMEM
        return pl.BlockSpec(arr.shape, lambda i: (0, 0))

    in_specs = [act_spec(input_size)] + [resident_spec(a) for a in wb]
    out_specs = (act_spec(input_size), act_spec(latent_size))

    recon, z = pl.pallas_call(
        wae_forward_kernel,
        grid=grid,
        out_shape=(
            jax.ShapeDtypeStruct((B_pad, input_size), out_dtype),   # recon
            jax.ShapeDtypeStruct((B_pad, latent_size), out_dtype),  # z
        ),
        in_specs=in_specs,
        out_specs=out_specs,
        compiler_params=pltpu.CompilerParams(
            dimension_semantics=("parallel",),
            vmem_limit_bytes=_VMEM_LIMIT),
    )(x_p, *wb)

    return recon[:B], z[:B]


def init_params(key, input_size, h1, h2, h3, latent):
    """Deterministic synthetic parameter init (weights stored as (in, out))."""
    dims_enc = [(input_size, h1), (h1, h2), (h2, h3), (h3, latent)]
    dims_dec = [(latent, h3), (h3, h2), (h2, h1), (h1, input_size)]
    params = {}
    keys = jax.random.split(key, 16)
    ki = 0
    for idx, (din, dout) in enumerate(dims_enc, start=1):
        scale = 1.0 / jnp.sqrt(jnp.float32(din))
        params[f"we{idx}"] = (
            jax.random.uniform(keys[ki], (din, dout), jnp.float32, -1.0, 1.0) * scale)
        ki += 1
        params[f"be{idx}"] = (
            jax.random.uniform(keys[ki], (1, dout), jnp.float32, -1.0, 1.0) * scale)
        ki += 1
    for idx, (din, dout) in enumerate(dims_dec, start=1):
        scale = 1.0 / jnp.sqrt(jnp.float32(din))
        params[f"wd{idx}"] = (
            jax.random.uniform(keys[ki], (din, dout), jnp.float32, -1.0, 1.0) * scale)
        ki += 1
        params[f"bd{idx}"] = (
            jax.random.uniform(keys[ki], (1, dout), jnp.float32, -1.0, 1.0) * scale)
        ki += 1
    return params


def wae_forward_reference(x, p):
    """Pure-JAX f32 reference for correctness checking."""
    h = x
    h = _leaky_relu(h @ p["we1"] + p["be1"])
    h = _leaky_relu(h @ p["we2"] + p["be2"])
    h = _leaky_relu(h @ p["we3"] + p["be3"])
    z = h @ p["we4"] + p["be4"]
    h = _leaky_relu(z @ p["wd1"] + p["bd1"])
    h = _leaky_relu(h @ p["wd2"] + p["bd2"])
    h = _leaky_relu(h @ p["wd3"] + p["bd3"])
    recon = jax.nn.sigmoid(h @ p["wd4"] + p["bd4"])
    return recon, z


if __name__ == "__main__":
    # Small shapes consistent with the module's MLP structure.
    input_size, h1, h2, h3, latent = 64, 32, 32, 16, 8

    key = jax.random.PRNGKey(0)
    kx, kp, kx2 = jax.random.split(key, 3)
    params = init_params(kp, input_size, h1, h2, h3, latent)

    # --- small single-tile case (B = 8) ---
    B = 8
    x = jax.random.uniform(kx, (B, input_size), jnp.float32)  # sigmoid-range inputs
    recon, z = wae_forward(x, params)
    jax.block_until_ready((recon, z))

    recon_ref, z_ref = wae_forward_reference(x, params)
    assert recon.shape == (B, input_size) and z.shape == (B, latent)
    # bf16 MXU inputs -> allow small drift vs the f32 reference
    assert jnp.allclose(recon, recon_ref, atol=2e-2, rtol=2e-2)
    assert jnp.allclose(z, z_ref, atol=2e-2, rtol=2e-2)

    # --- default heuristic: B=64 -> 2 grid steps of 32 (exercises megacore path) ---
    B2 = 64
    x2 = jax.random.uniform(kx2, (B2, input_size), jnp.float32)
    recon2, z2 = wae_forward(x2, params)
    jax.block_until_ready((recon2, z2))

    recon2_ref, z2_ref = wae_forward_reference(x2, params)
    assert jnp.allclose(recon2, recon2_ref, atol=2e-2, rtol=2e-2)
    assert jnp.allclose(z2, z2_ref, atol=2e-2, rtol=2e-2)

    # --- explicit small tile: 4 pipelined grid steps of 16, with batch padding ---
    recon3, z3 = wae_forward(x2[:60], params, tile_b=16)
    jax.block_until_ready((recon3, z3))
    assert recon3.shape == (60, input_size) and z3.shape == (60, latent)
    assert jnp.allclose(recon3, recon2_ref[:60], atol=2e-2, rtol=2e-2)
    assert jnp.allclose(z3, z2_ref[:60], atol=2e-2, rtol=2e-2)

    print("KERNEL_OK")
</pallas_src>

<mosaic_0001>
module attributes {stable_mosaic.version = 11 : i64} {
  func.func @wae_forward_kernel(%arg0: i32, %arg1: memref<8x64xf32, #tpu.memory_space<vmem>>, %arg2: memref<64x32xbf16, #tpu.memory_space<vmem>>, %arg3: memref<1x32xf32, #tpu.memory_space<vmem>>, %arg4: memref<32x32xbf16, #tpu.memory_space<vmem>>, %arg5: memref<1x32xf32, #tpu.memory_space<vmem>>, %arg6: memref<32x16xbf16, #tpu.memory_space<vmem>>, %arg7: memref<1x16xf32, #tpu.memory_space<vmem>>, %arg8: memref<16x8xbf16, #tpu.memory_space<vmem>>, %arg9: memref<1x8xf32, #tpu.memory_space<vmem>>, %arg10: memref<8x16xbf16, #tpu.memory_space<vmem>>, %arg11: memref<1x16xf32, #tpu.memory_space<vmem>>, %arg12: memref<16x32xbf16, #tpu.memory_space<vmem>>, %arg13: memref<1x32xf32, #tpu.memory_space<vmem>>, %arg14: memref<32x32xbf16, #tpu.memory_space<vmem>>, %arg15: memref<1x32xf32, #tpu.memory_space<vmem>>, %arg16: memref<32x64xbf16, #tpu.memory_space<vmem>>, %arg17: memref<1x64xf32, #tpu.memory_space<vmem>>, %arg18: memref<8x64xf32, #tpu.memory_space<vmem>>, %arg19: memref<8x8xf32, #tpu.memory_space<vmem>>) attributes {dimension_semantics = [#tpu.dimension_semantics<parallel>], iteration_bounds = array<i64: 1>, scalar_prefetch = 0 : i64, scratch_operands = 0 : i64, tpu.core_type = #tpu.core_type<tc>, window_params = [{transform_indices = @transform_0, window_bounds = array<i64: 8, 64>}, {pipeline_mode = #tpu.pipeline_mode<synchronous>, transform_indices = @transform_1, window_bounds = array<i64: 64, 32>}, {pipeline_mode = #tpu.pipeline_mode<synchronous>, transform_indices = @transform_2, window_bounds = array<i64: 1, 32>}, {pipeline_mode = #tpu.pipeline_mode<synchronous>, transform_indices = @transform_3, window_bounds = array<i64: 32, 32>}, {pipeline_mode = #tpu.pipeline_mode<synchronous>, transform_indices = @transform_4, window_bounds = array<i64: 1, 32>}, {pipeline_mode = #tpu.pipeline_mode<synchronous>, transform_indices = @transform_5, window_bounds = array<i64: 32, 16>}, {pipeline_mode = #tpu.pipeline_mode<synchronous>, transform_indices = @transform_6, window_bounds = array<i64: 1, 16>}, {pipeline_mode = #tpu.pipeline_mode<synchronous>, transform_indices = @transform_7, window_bounds = array<i64: 16, 8>}, {pipeline_mode = #tpu.pipeline_mode<synchronous>, transform_indices = @transform_8, window_bounds = array<i64: 1, 8>}, {pipeline_mode = #tpu.pipeline_mode<synchronous>, transform_indices = @transform_9, window_bounds = array<i64: 8, 16>}, {pipeline_mode = #tpu.pipeline_mode<synchronous>, transform_indices = @transform_10, window_bounds = array<i64: 1, 16>}, {pipeline_mode = #tpu.pipeline_mode<synchronous>, transform_indices = @transform_11, window_bounds = array<i64: 16, 32>}, {pipeline_mode = #tpu.pipeline_mode<synchronous>, transform_indices = @transform_12, window_bounds = array<i64: 1, 32>}, {pipeline_mode = #tpu.pipeline_mode<synchronous>, transform_indices = @transform_13, window_bounds = array<i64: 32, 32>}, {pipeline_mode = #tpu.pipeline_mode<synchronous>, transform_indices = @transform_14, window_bounds = array<i64: 1, 32>}, {pipeline_mode = #tpu.pipeline_mode<synchronous>, transform_indices = @transform_15, window_bounds = array<i64: 32, 64>}, {pipeline_mode = #tpu.pipeline_mode<synchronous>, transform_indices = @transform_16, window_bounds = array<i64: 1, 64>}, {transform_indices = @transform_17, window_bounds = array<i64: 8, 64>}, {transform_indices = @transform_18, window_bounds = array<i64: 8, 8>}]} {
    %c0 = arith.constant 0 : index
    %c0_0 = arith.constant 0 : index
    %0 = vector.load %arg1[%c0, %c0_0] : memref<8x64xf32, #tpu.memory_space<vmem>>, vector<8x64xf32>
    %1 = arith.truncf %0 : vector<8x64xf32> to vector<8x64xbf16>
    %c0_1 = arith.constant 0 : index
    %c0_2 = arith.constant 0 : index
    %2 = vector.load %arg2[%c0_1, %c0_2] : memref<64x32xbf16, #tpu.memory_space<vmem>>, vector<64x32xbf16>
    %cst = arith.constant dense<0.000000e+00> : vector<8x32xf32>
    %3 = tpu.matmul %1, %2, %cst {dimension_numbers = #tpu.dot_dimension_numbers<[1], [0], [0], [1], [0, 0, 1, 1], [], []>} : vector<8x64xbf16>, vector<64x32xbf16>, vector<8x32xf32> -> vector<8x32xf32>
    %c0_3 = arith.constant 0 : index
    %c0_4 = arith.constant 0 : index
    %4 = vector.load %arg3[%c0_3, %c0_4] : memref<1x32xf32, #tpu.memory_space<vmem>>, vector<1x32xf32>
    %5 = vector.broadcast %4 : vector<1x32xf32> to vector<8x32xf32>
    %6 = arith.addf %3, %5 : vector<8x32xf32>
    %cst_5 = arith.constant 0.000000e+00 : f32
    %7 = vector.broadcast %cst_5 : f32 to vector<8x32xf32>
    %8 = arith.cmpf oge, %6, %7 : vector<8x32xf32>
    %cst_6 = arith.constant 0.00999999977 : f32
    %9 = vector.broadcast %cst_6 : f32 to vector<8x32xf32>
    %10 = arith.mulf %9, %6 : vector<8x32xf32>
    %11 = arith.select %8, %6, %10 : vector<8x32xi1>, vector<8x32xf32>
    %12 = arith.truncf %11 : vector<8x32xf32> to vector<8x32xbf16>
    %c0_7 = arith.constant 0 : index
    %c0_8 = arith.constant 0 : index
    %13 = vector.load %arg4[%c0_7, %c0_8] : memref<32x32xbf16, #tpu.memory_space<vmem>>, vector<32x32xbf16>
    %cst_9 = arith.constant dense<0.000000e+00> : vector<8x32xf32>
    %14 = tpu.matmul %12, %13, %cst_9 {dimension_numbers = #tpu.dot_dimension_numbers<[1], [0], [0], [1], [0, 0, 1, 1], [], []>} : vector<8x32xbf16>, vector<32x32xbf16>, vector<8x32xf32> -> vector<8x32xf32>
    %c0_10 = arith.constant 0 : index
    %c0_11 = arith.constant 0 : index
    %15 = vector.load %arg5[%c0_10, %c0_11] : memref<1x32xf32, #tpu.memory_space<vmem>>, vector<1x32xf32>
    %16 = vector.broadcast %15 : vector<1x32xf32> to vector<8x32xf32>
    %17 = arith.addf %14, %16 : vector<8x32xf32>
    %cst_12 = arith.constant 0.000000e+00 : f32
    %18 = vector.broadcast %cst_12 : f32 to vector<8x32xf32>
    %19 = arith.cmpf oge, %17, %18 : vector<8x32xf32>
    %cst_13 = arith.constant 0.00999999977 : f32
    %20 = vector.broadcast %cst_13 : f32 to vector<8x32xf32>
    %21 = arith.mulf %20, %17 : vector<8x32xf32>
    %22 = arith.select %19, %17, %21 : vector<8x32xi1>, vector<8x32xf32>
    %23 = arith.truncf %22 : vector<8x32xf32> to vector<8x32xbf16>
    %c0_14 = arith.constant 0 : index
    %c0_15 = arith.constant 0 : index
    %24 = vector.load %arg6[%c0_14, %c0_15] : memref<32x16xbf16, #tpu.memory_space<vmem>>, vector<32x16xbf16>
    %cst_16 = arith.constant dense<0.000000e+00> : vector<8x16xf32>
    %25 = tpu.matmul %23, %24, %cst_16 {dimension_numbers = #tpu.dot_dimension_numbers<[1], [0], [0], [1], [0, 0, 1, 1], [], []>} : vector<8x32xbf16>, vector<32x16xbf16>, vector<8x16xf32> -> vector<8x16xf32>
    %c0_17 = arith.constant 0 : index
    %c0_18 = arith.constant 0 : index
    %26 = vector.load %arg7[%c0_17, %c0_18] : memref<1x16xf32, #tpu.memory_space<vmem>>, vector<1x16xf32>
    %27 = vector.broadcast %26 : vector<1x16xf32> to vector<8x16xf32>
    %28 = arith.addf %25, %27 : vector<8x16xf32>
    %cst_19 = arith.constant 0.000000e+00 : f32
    %29 = vector.broadcast %cst_19 : f32 to vector<8x16xf32>
    %30 = arith.cmpf oge, %28, %29 : vector<8x16xf32>
    %cst_20 = arith.constant 0.00999999977 : f32
    %31 = vector.broadcast %cst_20 : f32 to vector<8x16xf32>
    %32 = arith.mulf %31, %28 : vector<8x16xf32>
    %33 = arith.select %30, %28, %32 : vector<8x16xi1>, vector<8x16xf32>
    %34 = arith.truncf %33 : vector<8x16xf32> to vector<8x16xbf16>
    %c0_21 = arith.constant 0 : index
    %c0_22 = arith.constant 0 : index
    %35 = vector.load %arg8[%c0_21, %c0_22] : memref<16x8xbf16, #tpu.memory_space<vmem>>, vector<16x8xbf16>
    %cst_23 = arith.constant dense<0.000000e+00> : vector<8x8xf32>
    %36 = tpu.matmul %34, %35, %cst_23 {dimension_numbers = #tpu.dot_dimension_numbers<[1], [0], [0], [1], [0, 0, 1, 1], [], []>} : vector<8x16xbf16>, vector<16x8xbf16>, vector<8x8xf32> -> vector<8x8xf32>
    %c0_24 = arith.constant 0 : index
    %c0_25 = arith.constant 0 : index
    %37 = vector.load %arg9[%c0_24, %c0_25] : memref<1x8xf32, #tpu.memory_space<vmem>>, vector<1x8xf32>
    %38 = vector.broadcast %37 : vector<1x8xf32> to vector<8x8xf32>
    %39 = arith.addf %36, %38 : vector<8x8xf32>
    %c0_26 = arith.constant 0 : index
    %c0_27 = arith.constant 0 : index
    %40 = vector.load %arg19[%c0_26, %c0_27] : memref<8x8xf32, #tpu.memory_space<vmem>>, vector<8x8xf32>
    tpu.vector_store %arg19[%c0_26, %c0_27], %39 {strides = array<i32>} : memref<8x8xf32, #tpu.memory_space<vmem>>, vector<8x8xf32>,
    %41 = arith.truncf %39 : vector<8x8xf32> to vector<8x8xbf16>
    %c0_28 = arith.constant 0 : index
    %c0_29 = arith.constant 0 : index
    %42 = vector.load %arg10[%c0_28, %c0_29] : memref<8x16xbf16, #tpu.memory_space<vmem>>, vector<8x16xbf16>
    %cst_30 = arith.constant dense<0.000000e+00> : vector<8x16xf32>
    %43 = tpu.matmul %41, %42, %cst_30 {dimension_numbers = #tpu.dot_dimension_numbers<[1], [0], [0], [1], [0, 0, 1, 1], [], []>} : vector<8x8xbf16>, vector<8x16xbf16>, vector<8x16xf32> -> vector<8x16xf32>
    %c0_31 = arith.constant 0 : index
    %c0_32 = arith.constant 0 : index
    %44 = vector.load %arg11[%c0_31, %c0_32] : memref<1x16xf32, #tpu.memory_space<vmem>>, vector<1x16xf32>
    %45 = vector.broadcast %44 : vector<1x16xf32> to vector<8x16xf32>
    %46 = arith.addf %43, %45 : vector<8x16xf32>
    %cst_33 = arith.constant 0.000000e+00 : f32
    %47 = vector.broadcast %cst_33 : f32 to vector<8x16xf32>
    %48 = arith.cmpf oge, %46, %47 : vector<8x16xf32>
    %cst_34 = arith.constant 0.00999999977 : f32
    %49 = vector.broadcast %cst_34 : f32 to vector<8x16xf32>
    %50 = arith.mulf %49, %46 : vector<8x16xf32>
    %51 = arith.select %48, %46, %50 : vector<8x16xi1>, vector<8x16xf32>
    %52 = arith.truncf %51 : vector<8x16xf32> to vector<8x16xbf16>
    %c0_35 = arith.constant 0 : index
    %c0_36 = arith.constant 0 : index
    %53 = vector.load %arg12[%c0_35, %c0_36] : memref<16x32xbf16, #tpu.memory_space<vmem>>, vector<16x32xbf16>
    %cst_37 = arith.constant dense<0.000000e+00> : vector<8x32xf32>
    %54 = tpu.matmul %52, %53, %cst_37 {dimension_numbers = #tpu.dot_dimension_numbers<[1], [0], [0], [1], [0, 0, 1, 1], [], []>} : vector<8x16xbf16>, vector<16x32xbf16>, vector<8x32xf32> -> vector<8x32xf32>
    %c0_38 = arith.constant 0 : index
    %c0_39 = arith.constant 0 : index
    %55 = vector.load %arg13[%c0_38, %c0_39] : memref<1x32xf32, #tpu.memory_space<vmem>>, vector<1x32xf32>
    %56 = vector.broadcast %55 : vector<1x32xf32> to vector<8x32xf32>
    %57 = arith.addf %54, %56 : vector<8x32xf32>
    %cst_40 = arith.constant 0.000000e+00 : f32
    %58 = vector.broadcast %cst_40 : f32 to vector<8x32xf32>
    %59 = arith.cmpf oge, %57, %58 : vector<8x32xf32>
    %cst_41 = arith.constant 0.00999999977 : f32
    %60 = vector.broadcast %cst_41 : f32 to vector<8x32xf32>
    %61 = arith.mulf %60, %57 : vector<8x32xf32>
    %62 = arith.select %59, %57, %61 : vector<8x32xi1>, vector<8x32xf32>
    %63 = arith.truncf %62 : vector<8x32xf32> to vector<8x32xbf16>
    %c0_42 = arith.constant 0 : index
    %c0_43 = arith.constant 0 : index
    %64 = vector.load %arg14[%c0_42, %c0_43] : memref<32x32xbf16, #tpu.memory_space<vmem>>, vector<32x32xbf16>
    %cst_44 = arith.constant dense<0.000000e+00> : vector<8x32xf32>
    %65 = tpu.matmul %63, %64, %cst_44 {dimension_numbers = #tpu.dot_dimension_numbers<[1], [0], [0], [1], [0, 0, 1, 1], [], []>} : vector<8x32xbf16>, vector<32x32xbf16>, vector<8x32xf32> -> vector<8x32xf32>
    %c0_45 = arith.constant 0 : index
    %c0_46 = arith.constant 0 : index
    %66 = vector.load %arg15[%c0_45, %c0_46] : memref<1x32xf32, #tpu.memory_space<vmem>>, vector<1x32xf32>
    %67 = vector.broadcast %66 : vector<1x32xf32> to vector<8x32xf32>
    %68 = arith.addf %65, %67 : vector<8x32xf32>
    %cst_47 = arith.constant 0.000000e+00 : f32
    %69 = vector.broadcast %cst_47 : f32 to vector<8x32xf32>
    %70 = arith.cmpf oge, %68, %69 : vector<8x32xf32>
    %cst_48 = arith.constant 0.00999999977 : f32
    %71 = vector.broadcast %cst_48 : f32 to vector<8x32xf32>
    %72 = arith.mulf %71, %68 : vector<8x32xf32>
    %73 = arith.select %70, %68, %72 : vector<8x32xi1>, vector<8x32xf32>
    %74 = arith.truncf %73 : vector<8x32xf32> to vector<8x32xbf16>
    %c0_49 = arith.constant 0 : index
    %c0_50 = arith.constant 0 : index
    %75 = vector.load %arg16[%c0_49, %c0_50] : memref<32x64xbf16, #tpu.memory_space<vmem>>, vector<32x64xbf16>
    %cst_51 = arith.constant dense<0.000000e+00> : vector<8x64xf32>
    %76 = tpu.matmul %74, %75, %cst_51 {dimension_numbers = #tpu.dot_dimension_numbers<[1], [0], [0], [1], [0, 0, 1, 1], [], []>} : vector<8x32xbf16>, vector<32x64xbf16>, vector<8x64xf32> -> vector<8x64xf32>
    %c0_52 = arith.constant 0 : index
    %c0_53 = arith.constant 0 : index
    %77 = vector.load %arg17[%c0_52, %c0_53] : memref<1x64xf32, #tpu.memory_space<vmem>>, vector<1x64xf32>
    %78 = vector.broadcast %77 : vector<1x64xf32> to vector<8x64xf32>
    %79 = arith.addf %76, %78 : vector<8x64xf32>
    %80 = arith.negf %79 : vector<8x64xf32>
    %81 = math.exp %80 : vector<8x64xf32>
    %cst_54 = arith.constant 1.000000e+00 : f32
    %82 = vector.broadcast %cst_54 : f32 to vector<8x64xf32>
    %83 = arith.addf %82, %81 : vector<8x64xf32>
    %84 = arith.divf %82, %83 : vector<8x64xf32>
    %c0_55 = arith.constant 0 : index
    %c0_56 = arith.constant 0 : index
    %85 = vector.load %arg18[%c0_55, %c0_56] : memref<8x64xf32, #tpu.memory_space<vmem>>, vector<8x64xf32>
    tpu.vector_store %arg18[%c0_55, %c0_56], %84 {strides = array<i32>} : memref<8x64xf32, #tpu.memory_space<vmem>>, vector<8x64xf32>,
    return
  }
  func.func @transform_0(%arg0: i32) -> (i32, i32) {
    %c0_i32 = arith.constant 0 : i32
    %c0_i32_0 = arith.constant 0 : i32
    return %arg0, %c0_i32 : i32, i32
  }
  func.func @transform_1(%arg0: i32) -> (i32, i32) {
    %c0_i32 = arith.constant 0 : i32
    %c0_i32_0 = arith.constant 0 : i32
    %c0_i32_1 = arith.constant 0 : i32
    return %c0_i32, %c0_i32_0 : i32, i32
  }
  func.func @transform_2(%arg0: i32) -> (i32, i32) {
    %c0_i32 = arith.constant 0 : i32
    %c0_i32_0 = arith.constant 0 : i32
    %c0_i32_1 = arith.constant 0 : i32
    return %c0_i32, %c0_i32_0 : i32, i32
  }
  func.func @transform_3(%arg0: i32) -> (i32, i32) {
    %c0_i32 = arith.constant 0 : i32
    %c0_i32_0 = arith.constant 0 : i32
    %c0_i32_1 = arith.constant 0 : i32
    return %c0_i32, %c0_i32_0 : i32, i32
  }
  func.func @transform_4(%arg0: i32) -> (i32, i32) {
    %c0_i32 = arith.constant 0 : i32
    %c0_i32_0 = arith.constant 0 : i32
    %c0_i32_1 = arith.constant 0 : i32
    return %c0_i32, %c0_i32_0 : i32, i32
  }
  func.func @transform_5(%arg0: i32) -> (i32, i32) {
    %c0_i32 = arith.constant 0 : i32
    %c0_i32_0 = arith.constant 0 : i32
    %c0_i32_1 = arith.constant 0 : i32
    return %c0_i32, %c0_i32_0 : i32, i32
  }
  func.func @transform_6(%arg0: i32) -> (i32, i32) {
    %c0_i32 = arith.constant 0 : i32
    %c0_i32_0 = arith.constant 0 : i32
    %c0_i32_1 = arith.constant 0 : i32
    return %c0_i32, %c0_i32_0 : i32, i32
  }
  func.func @transform_7(%arg0: i32) -> (i32, i32) {
    %c0_i32 = arith.constant 0 : i32
    %c0_i32_0 = arith.constant 0 : i32
    %c0_i32_1 = arith.constant 0 : i32
    return %c0_i32, %c0_i32_0 : i32, i32
  }
  func.func @transform_8(%arg0: i32) -> (i32, i32) {
    %c0_i32 = arith.constant 0 : i32
    %c0_i32_0 = arith.constant 0 : i32
    %c0_i32_1 = arith.constant 0 : i32
    return %c0_i32, %c0_i32_0 : i32, i32
  }
  func.func @transform_9(%arg0: i32) -> (i32, i32) {
    %c0_i32 = arith.constant 0 : i32
    %c0_i32_0 = arith.constant 0 : i32
    %c0_i32_1 = arith.constant 0 : i32
    return %c0_i32, %c0_i32_0 : i32, i32
  }
  func.func @transform_10(%arg0: i32) -> (i32, i32) {
    %c0_i32 = arith.constant 0 : i32
    %c0_i32_0 = arith.constant 0 : i32
    %c0_i32_1 = arith.constant 0 : i32
    return %c0_i32, %c0_i32_0 : i32, i32
  }
  func.func @transform_11(%arg0: i32) -> (i32, i32) {
    %c0_i32 = arith.constant 0 : i32
    %c0_i32_0 = arith.constant 0 : i32
    %c0_i32_1 = arith.constant 0 : i32
    return %c0_i32, %c0_i32_0 : i32, i32
  }
  func.func @transform_12(%arg0: i32) -> (i32, i32) {
    %c0_i32 = arith.constant 0 : i32
    %c0_i32_0 = arith.constant 0 : i32
    %c0_i32_1 = arith.constant 0 : i32
    return %c0_i32, %c0_i32_0 : i32, i32
  }
  func.func @transform_13(%arg0: i32) -> (i32, i32) {
    %c0_i32 = arith.constant 0 : i32
    %c0_i32_0 = arith.constant 0 : i32
    %c0_i32_1 = arith.constant 0 : i32
    return %c0_i32, %c0_i32_0 : i32, i32
  }
  func.func @transform_14(%arg0: i32) -> (i32, i32) {
    %c0_i32 = arith.constant 0 : i32
    %c0_i32_0 = arith.constant 0 : i32
    %c0_i32_1 = arith.constant 0 : i32
    return %c0_i32, %c0_i32_0 : i32, i32
  }
  func.func @transform_15(%arg0: i32) -> (i32, i32) {
    %c0_i32 = arith.constant 0 : i32
    %c0_i32_0 = arith.constant 0 : i32
    %c0_i32_1 = arith.constant 0 : i32
    return %c0_i32, %c0_i32_0 : i32, i32
  }
  func.func @transform_16(%arg0: i32) -> (i32, i32) {
    %c0_i32 = arith.constant 0 : i32
    %c0_i32_0 = arith.constant 0 : i32
    %c0_i32_1 = arith.constant 0 : i32
    return %c0_i32, %c0_i32_0 : i32, i32
  }
  func.func @transform_17(%arg0: i32) -> (i32, i32) {
    %c0_i32 = arith.constant 0 : i32
    %c0_i32_0 = arith.constant 0 : i32
    return %arg0, %c0_i32 : i32, i32
  }
  func.func @transform_18(%arg0: i32) -> (i32, i32) {
    %c0_i32 = arith.constant 0 : i32
    %c0_i32_0 = arith.constant 0 : i32
    return %arg0, %c0_i32 : i32, i32
  }
}

</mosaic_0001>

<bundles_post_ra>
// kernel: wae_forward.1
= control target key start
LH: loop header
LB: loop body
LE: loop exit
PB: predicated region body
PF: predicated region fallthrough
CT: control target
= control target key end

     0   :  { %s1065_s0 = inlined_call_operand.vmem [shape: f32[8,64], index: 0, kind: input, shape index: {}]   ;;  %s1066_s1 = inlined_call_operand.vmem [shape: bf16[64,32], index: 1, kind: input, shape index: {}]   ;;  %s1067_s2 = inlined_call_operand.vmem [shape: f32[1,32], index: 2, kind: input, shape index: {}]   ;;  %s1068_s3 = inlined_call_operand.vmem [shape: bf16[32,32], index: 3, kind: input, shape index: {}]   ;;  %s1069_s4 = inlined_call_operand.vmem [shape: f32[1,32], index: 4, kind: input, shape index: {}]   ;;  %s1070_s5 = inlined_call_operand.vmem [shape: bf16[32,16], index: 5, kind: input, shape index: {}]   ;;  %s1071_s6 = inlined_call_operand.vmem [shape: f32[1,16], index: 6, kind: input, shape index: {}]   ;;  %s1072_s7 = inlined_call_operand.vmem [shape: bf16[16,8], index: 7, kind: input, shape index: {}]   ;;  %s1073_s8 = inlined_call_operand.vmem [shape: f32[1,8], index: 8, kind: input, shape index: {}]   ;;  %s1074_s9 = inlined_call_operand.vmem [shape: bf16[8,16], index: 9, kind: input, shape index: {}]   ;;  %s1075_s10 = inlined_call_operand.vmem [shape: f32[1,16], index: 10, kind: input, shape index: {}]   ;;  %s1076_s11 = inlined_call_operand.vmem [shape: bf16[16,32], index: 11, kind: input, shape index: {}]   ;;  %s1077_s12 = inlined_call_operand.vmem [shape: f32[1,32], index: 12, kind: input, shape index: {}]   ;;  %s1078_s13 = inlined_call_operand.vmem [shape: bf16[32,32], index: 13, kind: input, shape index: {}]   ;;  %s1079_s14 = inlined_call_operand.vmem [shape: f32[1,32], index: 14, kind: input, shape index: {}]   ;;  %s1080_s15 = inlined_call_operand.vmem [shape: bf16[32,64], index: 15, kind: input, shape index: {}]   ;;  %s1081_s16 = inlined_call_operand.vmem [shape: f32[1,64], index: 16, kind: input, shape index: {}]   ;;  %s1082_s17 = inlined_call_operand.hbm [shape: f32[8,64], index: 17, kind: output, shape index: {0}]   ;;  %s1083_s18 = inlined_call_operand.hbm [shape: f32[8,8], index: 18, kind: output, shape index: {1}]  }
   0x1   :  { %1085 = sst [smem:[#allocation8_spill]] %s1065_s0 }
   0x2   :  { %1086 = sst [smem:[#allocation9_spill]] %s1066_s1 }
   0x3   :  { %1087 = sst [smem:[#allocation10_spill]] %s1067_s2 }
   0x4   :  { %24 = vsyncpa [#allocation3], 0  ;;  %s1088_s29 = sld [smem:[#allocation9_spill]]  ;;  %v831_v1 = vmov 0.0   ;;  %vm832_vm0 = vmmov 0   ;;  %s1089_s23 = sld [smem:[#allocation8_spill]] }
   0x5   :  { %699 = vmatprep.subr.bf16.mxu0 %v831_v1  ;;  %711 = vmatprep.subr.bf16.mxu1 %v831_v1 }
   0x6   :  { %707 = vmatprep.mubr.msk.bf16.mxu0 %vm832_vm0, %v831_v1  ;;  %715 = vmatprep.mubr.msk.bf16.mxu1 %vm832_vm0, %v831_v1 }
   0xa   :  { %v765_v0 = vld [vmem:[%s1088_s29] sm:$0xff]   ;;  %v766_v2 = vld [vmem:[%s1088_s29 + $0x8] sm:$0xff]   ;;  %v767_v3 = vld [vmem:[%s1088_s29 + $0x10] sm:$0xff]  }
   0xb   :  { %700 = vmatpush3.bf16.msra.mxu0 %v765_v0  ;;  %v768_v4 = vld [vmem:[%s1088_s29 + $0x18] sm:$0xff]   ;;  %v61_v5 = vld [vmem:[%s1089_s23] sm:$0xff] }
   0xc   :  { %701 = vmatprep.subr.bf16.mxu0 %v831_v1 }
   0xf   :  { %702 = vmatpush3.bf16.msra.mxu0 %v766_v2 }
  0x10   :  { %703 = vmatprep.subr.bf16.mxu0 %v831_v1 }
  0x13   :  { %704 = vmatpush3.bf16.msra.mxu0 %v767_v3 }
  0x14   :  { %705 = vmatprep.subr.bf16.mxu0 %v831_v1 }
  0x15   :  { %25 = vsyncpa [#allocation5], 0  ;;  %v62_v6 = vpack.c.bf16 %v61_v5, %v61_v5  ;;  %vm102_vm1 = vcmask 523264   ;;  %v769_v7 = vld [vmem:[%s1068_s3] sm:$0xff]   ;;  %v770_v8 = vld [vmem:[%s1068_s3 + $0x8] sm:$0xff]   ;;  %s1090_s30 = sld [smem:[#allocation10_spill]] }
  0x16   :  { %712 = vmatpush3.bf16.msra.mxu1 %v769_v7  ;;  %vm173_vm3 = vcmask 261120   ;;  %v771_v18 = vld [vmem:[%s1070_s5] sm:$0xff]   ;;  %v772_v19 = vld [vmem:[%s1070_s5 + $0x8] sm:$0xff]   ;;  %vm364_vm5 = vcmask 1043456   ;;  %vm306_vm7 = vcmask 130048   ;;  %vm350_vm8 = vcmask 64512  }
  0x17   :  { %706 = vmatpush3.bf16.msra.mxu0 %v768_v4  ;;  %713 = vmatprep.subr.bf16.mxu1 %v831_v1  ;;  %v651_v20 = vld [vmem:[%s1069_s4] ss:$0 sm:$0xff]  ;;  %v776_v59 = vld [vmem:[%s1078_s13 + $0x8] sm:$0xff]   ;;  %s833_s20 = smov [#allocation4]  }
  0x18   :  { %727 = vmatprep.subr.bf16.mxu0 %v831_v1  ;;  %v773_v29 = vld [vmem:[%s1072_s7] sm:$0xff]   ;;  %v778_v7 = vld [vmem:[%s1080_s15 + $0x8] sm:$0xff]   ;;  %s633_s21 = sshll.u32 %s833_s20, 4  ;;  %s634_s21 = int_to_ptr.vmem [resolvable:$true] %s633_s21 }
  0x19   :  { %v353_v30 = vld [vmem:[%s1074_s9] sm:$0xf]  ;;  %p788_p1 = scmp.lt.s32.totalorder %s634_s21, %s634_s21 }
  0x1a   :  { %708 = vmatmul.mubr.msk.bf16.vlgmr.msra.gmra.mrb[0].mxu0 %vm102_vm1, %v62_v6  ;;  %714 = vmatpush3.bf16.msra.mxu1 %v770_v8  ;;  %v366_v31 = vsel %vm364_vm5, %v353_v30, 0  ;;  %v655_v32 = vld [vmem:[%s1071_s6] ss:$0 sm:$0xff] }
  0x1b   :  { %729 = vmatprep.mubr.msk.bf16.mxu0 %vm832_vm0, %v831_v1  ;;  %719 = vmatprep.subr.bf16.mxu1 %v831_v1  ;;  %v645_v9 = vld [vmem:[%s1090_s30] ss:$0 sm:$0xff] }
  0x1c   :  { %728 = vmatpush3.bf16.msra.mxu0 %v773_v29  ;;  %v659_v41 = vld [vmem:[%s1073_s8] ss:$0 sm:$0xff] }
  0x1d   :  { %739 = vmatprep.subr.bf16.mxu0 %v831_v1  ;;  %v774_v48 = vld [vmem:[%s1076_s11] sm:$0xff]  }
  0x1e   :  { %v662_v49 = vld [vmem:[%s1075_s10] ss:$0 sm:$0xff] }
  0x1f   :  { %v775_v58 = vld [vmem:[%s1078_s13] sm:$0xff]  }
  0x20   :  { %v664_v60 = vld [vmem:[%s1077_s12] ss:$0 sm:$0xff] }
  0x21   :  { %v777_v6 = vld [vmem:[%s1080_s15] sm:$0xff]   ;;  %s783_s15 = scalar_lea.vmem %s634_s21, 128 }
  0x22   :  { %v667_v8 = vld [vmem:[%s1079_s14] ss:$0 sm:$0xff]  ;;  %p784_p0 = scmp.ne.s32.totalorder %s634_s21, %s783_s15  ;;  %p789_p2 = scmp.lt.s32.totalorder %s783_s15, %s783_s15 }
  0x24   :  { %p790_p3 = por %p789_p2, %p788_p1 }
  0x26   :  { %p791_p4 = pnand %p790_p3, %p784_p0 }
  0xed   :  { %v140_v10 = vpop.f32.mrb[0].mxu0 }
  0xee   :  { %v141_v11 = vadd.f32 %v645_v9, %v140_v10  ;;  %v709_v12 = vpop.f32.mrb[1].mxu0 }
  0xef   :  { %v143_v13 = vpop.f32.mrb[2].mxu0 }
  0xf0   :  { %vm146_vm2 = vcmp.ge.f32.partialorder %v141_v11, 0.0  ;;  %v147_v14 = vmul.f32 0.01, %v141_v11  ;;  %v710_v15 = vpop.f32.mrb[3].mxu0 }
  0xf2   :  { %v148_v16 = vsel %vm146_vm2, %v141_v11, %v147_v14 }
  0xf3   :  { %v149_v17 = vpack.c.bf16 %v148_v16, %v148_v16 }
  0xf5   :  { %716 = vmatmul.mubr.msk.bf16.vlgmr.msra.gmra.mrb[0].mxu1 %vm173_vm3, %v149_v17 }
  0xf6   :  { %723 = vmatprep.mubr.msk.bf16.mxu1 %vm832_vm0, %v831_v1  ;;  %720 = vmatpush3.bf16.msra.mxu1 %v771_v18 }
  0xf7   :  { %721 = vmatprep.subr.bf16.mxu1 %v831_v1 }
  0xfa   :  { %722 = vmatpush3.bf16.msra.mxu1 %v772_v19 }
  0xfb   :  { %733 = vmatprep.subr.bf16.mxu1 %v831_v1 }
 0x1c8   :  { %v211_v21 = vpop.f32.mrb[0].mxu1 }
 0x1c9   :  { %v212_v22 = vadd.f32 %v651_v20, %v211_v21  ;;  %v717_v23 = vpop.f32.mrb[1].mxu1 }
 0x1ca   :  { %v214_v24 = vpop.f32.mrb[2].mxu1 }
 0x1cb   :  { %vm217_vm4 = vcmp.ge.f32.partialorder %v212_v22, 0.0  ;;  %v218_v25 = vmul.f32 0.01, %v212_v22  ;;  %v718_v26 = vpop.f32.mrb[3].mxu1 }
 0x1cd   :  { %v219_v27 = vsel %vm217_vm4, %v212_v22, %v218_v25 }
 0x1ce   :  { %v220_v28 = vpack.c.bf16 %v219_v27, %v219_v27 }
 0x1d0   :  { %724 = vmatmul.mubr.msk.bf16.vlgmr.msra.gmra.mrb[4].mxu1 %vm173_vm3, %v220_v28 }
 0x1d1   :  { %735 = vmatprep.mubr.msk.bf16.mxu1 %vm832_vm0, %v831_v1  ;;  %734 = vmatpush3.bf16.msra.mxu1 %v366_v31 }
 0x1d2   :  { %745 = vmatprep.subr.bf16.mxu1 %v831_v1 }
 0x2a3   :  { %v281_v33 = vpop.f32.mrb[4].mxu1 }
 0x2a4   :  { %v282_v34 = vadd.f32 %v655_v32, %v281_v33  ;;  %v725_v35 = vpop.f32.mrb[5].mxu1 }
 0x2a5   :  { %v284_v36 = vpop.f32.mrb[6].mxu1 }
 0x2a6   :  { %vm287_vm6 = vcmp.ge.f32.partialorder %v282_v34, 0.0  ;;  %v288_v37 = vmul.f32 0.01, %v282_v34  ;;  %v726_v38 = vpop.f32.mrb[7].mxu1 }
 0x2a8   :  { %v289_v39 = vsel %vm287_vm6, %v282_v34, %v288_v37 }
 0x2a9   :  { %v290_v40 = vpack.c.bf16 %v289_v39, %v289_v39 }
 0x2ab   :  { %730 = vmatmul.mubr.msk.bf16.vlgmr.msra.gmra.mrb[4].mxu0 %vm306_vm7, %v290_v40 }
 0x2ac   :  { %741 = vmatprep.mubr.msk.bf16.mxu0 %vm832_vm0, %v831_v1  ;;  %740 = vmatpush3.bf16.msra.mxu0 %v774_v48 }
 0x2ad   :  { %753 = vmatprep.subr.bf16.mxu0 %v831_v1 }
 0x37e   :  { %v344_v42 = vpop.f32.mrb[4].mxu0 }
 0x37f   :  { %v345_v43 = vadd.f32 %v659_v41, %v344_v42  ;;  %v731_v44 = vpop.f32.mrb[5].mxu0 }
 0x380   :  { %v347_v45 = vpop.f32.mrb[6].mxu0 }
 0x381   :  { %v352_v46 = vpack.c.bf16 %v345_v43, %v345_v43  ;;  %v732_v47 = vpop.f32.mrb[7].mxu0  ;;  %351 = vst.msk [vmem:[#allocation4] sm:$0xff] %vm350_vm8, %v345_v43 }
 0x383   :  { %736 = vmatmul.mubr.msk.bf16.vlgmr.msra.gmra.mrb[8].mxu1 %vm350_vm8, %v352_v46 }
 0x384   :  { %749 = vmatprep.mubr.msk.bf16.mxu1 %vm832_vm0, %v831_v1  ;;  %746 = vmatpush3.bf16.msra.mxu1 %v775_v58 }
 0x385   :  { %747 = vmatprep.subr.bf16.mxu1 %v831_v1 }
 0x388   :  { %748 = vmatpush3.bf16.msra.mxu1 %v776_v59 }
 0x456   :  { %v402_v50 = vpop.f32.mrb[8].mxu1 }
 0x457   :  { %v403_v51 = vadd.f32 %v662_v49, %v402_v50  ;;  %v737_v52 = vpop.f32.mrb[9].mxu1 }
 0x458   :  { %v405_v53 = vpop.f32.mrb[10].mxu1 }
 0x459   :  { %vm408_vm9 = vcmp.ge.f32.partialorder %v403_v51, 0.0  ;;  %v409_v54 = vmul.f32 0.01, %v403_v51  ;;  %v738_v55 = vpop.f32.mrb[11].mxu1 }
 0x45b   :  { %v410_v56 = vsel %vm408_vm9, %v403_v51, %v409_v54 }
 0x45c   :  { %v411_v57 = vpack.c.bf16 %v410_v56, %v410_v56 }
 0x45e   :  { %742 = vmatmul.mubr.msk.bf16.vlgmr.msra.gmra.mrb[8].mxu0 %vm306_vm7, %v411_v57 }
 0x45f   :  { %757 = vmatprep.mubr.msk.bf16.mxu0 %vm832_vm0, %v831_v1  ;;  %754 = vmatpush3.bf16.msra.mxu0 %v777_v6 }
 0x460   :  { %755 = vmatprep.subr.bf16.mxu0 %v831_v1 }
 0x463   :  { %756 = vmatpush3.bf16.msra.mxu0 %v778_v7 }
 0x531   :  { %v464_v61 = vpop.f32.mrb[8].mxu0 }
 0x532   :  { %v465_v62 = vadd.f32 %v664_v60, %v464_v61  ;;  %v743_v63 = vpop.f32.mrb[9].mxu0 }
 0x533   :  { %v467_v0 = vpop.f32.mrb[10].mxu0 }
 0x534   :  { %vm470_vm10 = vcmp.ge.f32.partialorder %v465_v62, 0.0  ;;  %v471_v2 = vmul.f32 0.01, %v465_v62  ;;  %v744_v3 = vpop.f32.mrb[11].mxu0 }
 0x536   :  { %v472_v4 = vsel %vm470_vm10, %v465_v62, %v471_v2 }
 0x537   :  { %v473_v5 = vpack.c.bf16 %v472_v4, %v472_v4 }
 0x539   :  { %750 = vmatmul.mubr.msk.bf16.vlgmr.msra.gmra.mrb[12].mxu1 %vm173_vm3, %v473_v5 }
 0x60c   :  { %v534_v9 = vpop.f32.mrb[12].mxu1 }
 0x60d   :  { %v535_v10 = vadd.f32 %v667_v8, %v534_v9  ;;  %v751_v11 = vpop.f32.mrb[13].mxu1 }
 0x60e   :  { %v537_v12 = vpop.f32.mrb[14].mxu1 }
 0x60f   :  { %vm540_vm11 = vcmp.ge.f32.partialorder %v535_v10, 0.0  ;;  %v541_v13 = vmul.f32 0.01, %v535_v10  ;;  %v752_v14 = vpop.f32.mrb[15].mxu1 }
 0x611   :  { %v542_v15 = vsel %vm540_vm11, %v535_v10, %v541_v13 }
 0x612   :  { %v543_v16 = vpack.c.bf16 %v542_v15, %v542_v15 }
 0x614   :  { %758 = vmatmul.mubr.msk.bf16.vlgmr.msra.gmra.mrb[12].mxu0 %vm173_vm3, %v543_v16 }
 0x615   :  { %794 = shalt.err (!%p791_p4)
}
 0x616   :  { %s795_s22 = scalar_lea.hbm %s1083_s18, 128 }
 0x617   :  { %p796_p5 = scmp.ne.s32.totalorder %s1083_s18, %s795_s22  ;;  %p799_p6 = scmp.lt.u32.totalorder %s795_s22, %s1083_s18 }
 0x619   :  { %p801_p7 = pnand %p799_p6, %p796_p5 }
 0x61b   :  { %804 = shalt.err (!%p801_p7)
}
 0x61c   :  { %636 = dma.vmem_to_hbm [thread:$0]  %s634_s21, 128, %s1083_s18, [#allocation5]   ;;  %v671_v1 = vld [vmem:[%s1081_s16] ss:$0 sm:$0xff] }
 0x61d   :  { %s834_s8 = smov [#allocation2]  }
 0x61e   :  { %s623_s26 = sshll.u32 %s834_s8, 4  ;;  %s624_s26 = int_to_ptr.vmem [resolvable:$true] %s623_s26 }
 0x61f   :  { %s805_s18 = scalar_lea.vmem %s624_s26, 128  ;;  %p810_p9 = scmp.lt.s32.totalorder %s624_s26, %s624_s26 }
 0x620   :  { %p806_p8 = scmp.ne.s32.totalorder %s624_s26, %s805_s18  ;;  %p811_p10 = scmp.lt.s32.totalorder %s805_s18, %s805_s18 }
 0x622   :  { %p812_p11 = por %p811_p10, %p810_p9 }
 0x624   :  { %p813_p12 = pnand %p812_p11, %p806_p8 }
 0x6e7   :  { %v604_v17 = vpop.f32.mrb[12].mxu0 }
 0x6e8   :  { %v605_v18 = vadd.f32 %v671_v1, %v604_v17  ;;  %v759_v19 = vpop.f32.mrb[13].mxu0 }
 0x6e9   :  { %v607_v20 = vpop.f32.mrb[14].mxu0 }
 0x6ea   :  { %v675_v21 = vmul.f32 -1.442695, %v605_v18  ;;  %v760_v22 = vpop.f32.mrb[15].mxu0 }
 0x6ec   :  { %779 = vpow2.f32 %v675_v21 }
 0x6f6   :  { %v780_v23 = vpop.eup %779 }
 0x6f7   :  { %v613_v24 = vadd.f32 1.0, %v780_v23 }
 0x6f9   :  { %781 = vrcp.f32 %v613_v24 }
 0x703   :  { %v782_v25 = vpop.eup %781 }
 0x704   :  { %616 = vst.msk [vmem:[#allocation2] sm:$0xff] %vm102_vm1, %v782_v25 }
 0x705   :  { %816 = shalt.err (!%p813_p12)
}
 0x706   :  { %s817_s27 = scalar_lea.hbm %s1082_s17, 128 }
 0x707   :  { %p818_p13 = scmp.ne.s32.totalorder %s1082_s17, %s817_s27  ;;  %p821_p0 = scmp.lt.u32.totalorder %s817_s27, %s1082_s17 }
 0x709   :  { %p823_p1 = pnand %p821_p0, %p818_p13 }
 0x70b   :  { %826 = shalt.err (!%p823_p1)
}
 0x70c   :  { %626 = dma.vmem_to_hbm [thread:$0]  %s624_s26, 128, %s1082_s17, [#allocation3]  }
 0x70d   :  { %827 = dma.done.wait [#allocation3], 128  }
 0x70e   :  { %828 = vsyncadd [#allocation3], 4294967168 }
 0x70f   :  { %829 = dma.done.wait [#allocation5], 128  }
 0x710   :  { %830 = vsyncadd [#allocation5], 4294967168 }
 0x711   :  { %643 = vsyncpa [#allocation3], 1 }
 0x712   :  { %644 = vsyncpa [#allocation5], 1 }

</bundles_post_ra>
